<compile_context>
chip_gen: v6e
topology: v6e:2x2x1
jax: 0.10.0
libtpu: 0.0.40
codegen_flags: <defaults>
</compile_context>

<pallas_src>
import functools

import jax
import jax.numpy as jnp
from jax.experimental import pallas as pl
from jax.experimental.pallas import tpu as pltpu


# ----------------------------------------------------------------------------
# Tiled two-pass path (general sizes)
# ----------------------------------------------------------------------------

def _stats_kernel(x_ref, sum_ref, sumsq_ref):
    # x_ref:     (c_blk, hw_blk)  -- N dim squeezed out by BlockSpec
    # sum_ref:   (c_blk, 1)  f32, resident accumulator across (N, HW) grid axes
    # sumsq_ref: (c_blk, 1)  f32
    first = (pl.program_id(1) == 0) & (pl.program_id(2) == 0)

    @pl.when(first)
    def _():
        sum_ref[...] = jnp.zeros_like(sum_ref)
        sumsq_ref[...] = jnp.zeros_like(sumsq_ref)

    x = x_ref[...].astype(jnp.float32)
    sum_ref[...] += jnp.sum(x, axis=-1, keepdims=True)
    sumsq_ref[...] += jnp.sum(x * x, axis=-1, keepdims=True)


def _normalize_kernel(x_ref, scale_ref, shift_ref, o_ref):
    # x_ref: (c_blk, hw_blk); scale/shift: (c_blk, 1) f32 (resident across inner axes)
    x = x_ref[...].astype(jnp.float32)
    y = x * scale_ref[...] + shift_ref[...]
    o_ref[...] = y.astype(o_ref.dtype)


def _choose_blocks(c, hw, target_bytes=2 * 1024 * 1024):
    """Pick (c_blk, hw_blk) obeying the (8,128)/full-extent rule, ~target_bytes (f32)."""
    elem = 4  # budget in f32 (in-kernel upcast)
    if hw % 128 == 0:
        hw_divs = [d for d in range(128, hw + 1, 128) if hw % d == 0]
    else:
        hw_divs = [hw]  # full extent is always legal
    if c % 8 == 0:
        c_divs = [d for d in range(8, c + 1, 8) if c % d == 0]
    else:
        c_divs = [c]    # full extent is always legal
    best = (c_divs[0], hw_divs[0])
    best_key = (best[0] * best[1], best[1])
    for cb in c_divs:
        for hb in hw_divs:
            if cb * hb * elem <= target_bytes:
                key = (cb * hb, hb)   # prefer bigger block, then lane-denser
                if key > best_key:
                    best, best_key = (cb, hb), key
    return best


def _bn_tiled(x_r, gamma, beta, eps):
    n, c, hw = x_r.shape
    c_blk, hw_blk = _choose_blocks(c, hw)
    grid = (c // c_blk, n, hw // hw_blk)
    itemsize = x_r.dtype.itemsize

    # ---- pass 1: per-channel sum / sum of squares -------------------------
    xsum, xsumsq = pl.pallas_call(
        _stats_kernel,
        out_shape=(jax.ShapeDtypeStruct((c, 1), jnp.float32),
                   jax.ShapeDtypeStruct((c, 1), jnp.float32)),
        grid_spec=pltpu.PrefetchScalarGridSpec(
            num_scalar_prefetch=0,
            grid=grid,
            in_specs=[pl.BlockSpec((None, c_blk, hw_blk),
                                   lambda ci, ni, hi: (ni, ci, hi))],
            out_specs=(pl.BlockSpec((c_blk, 1), lambda ci, ni, hi: (ci, 0)),
                       pl.BlockSpec((c_blk, 1), lambda ci, ni, hi: (ci, 0)))),
        compiler_params=pltpu.CompilerParams(
            dimension_semantics=("parallel", "arbitrary", "arbitrary"),
            vmem_limit_bytes=32 * 1024 * 1024),
        cost_estimate=pl.CostEstimate(flops=3 * int(x_r.size),
                                      transcendentals=0,
                                      bytes_accessed=int(x_r.size) * itemsize),
    )(x_r)

    # ---- tiny per-channel scale/shift fold (C elements, plain JAX) --------
    inv_count = jnp.float32(1.0 / (n * hw))
    mean = xsum[:, 0] * inv_count
    var = jnp.maximum(xsumsq[:, 0] * inv_count - mean * mean, 0.0)
    inv_std = jax.lax.rsqrt(var + jnp.float32(eps))
    g32 = gamma.astype(jnp.float32)
    b32 = beta.astype(jnp.float32)
    scale = (g32 * inv_std).reshape(c, 1)
    shift = (b32 - mean * g32 * inv_std).reshape(c, 1)

    # ---- pass 2: streaming normalize (1 mul + 1 add per element) ----------
    y_r = pl.pallas_call(
        _normalize_kernel,
        out_shape=jax.ShapeDtypeStruct((n, c, hw), x_r.dtype),
        grid_spec=pltpu.PrefetchScalarGridSpec(
            num_scalar_prefetch=0,
            grid=grid,
            in_specs=[pl.BlockSpec((None, c_blk, hw_blk),
                                   lambda ci, ni, hi: (ni, ci, hi)),
                      pl.BlockSpec((c_blk, 1), lambda ci, ni, hi: (ci, 0)),
                      pl.BlockSpec((c_blk, 1), lambda ci, ni, hi: (ci, 0))],
            out_specs=pl.BlockSpec((None, c_blk, hw_blk),
                                   lambda ci, ni, hi: (ni, ci, hi))),
        compiler_params=pltpu.CompilerParams(
            dimension_semantics=("parallel", "parallel", "parallel"),
            vmem_limit_bytes=32 * 1024 * 1024),
        cost_estimate=pl.CostEstimate(flops=2 * int(x_r.size),
                                      transcendentals=0,
                                      bytes_accessed=2 * int(x_r.size) * itemsize),
    )(x_r, scale, shift)
    return y_r


# ----------------------------------------------------------------------------
# Single-block fused fast path (small activations): one HBM read + one write
# ----------------------------------------------------------------------------

def _bn_small_kernel(x_ref, gamma_ref, beta_ref, o_ref, *, eps, inv_count):
    # x_ref: (N, C, HW) fully resident; gamma/beta: (1, C, 1)
    x = x_ref[...].astype(jnp.float32)
    s = jnp.sum(jnp.sum(x, axis=2, keepdims=True), axis=0, keepdims=True)
    ss = jnp.sum(jnp.sum(x * x, axis=2, keepdims=True), axis=0, keepdims=True)
    mean = s * jnp.float32(inv_count)
    var = jnp.maximum(ss * jnp.float32(inv_count) - mean * mean, 0.0)
    inv_std = jax.lax.rsqrt(var + jnp.float32(eps))
    scale = gamma_ref[...].astype(jnp.float32) * inv_std
    shift = beta_ref[...].astype(jnp.float32) - mean * scale
    o_ref[...] = (x * scale + shift).astype(o_ref.dtype)


def _bn_small(x_r, gamma, beta, eps):
    n, c, hw = x_r.shape
    return pl.pallas_call(
        functools.partial(_bn_small_kernel, eps=eps, inv_count=1.0 / (n * hw)),
        out_shape=jax.ShapeDtypeStruct((n, c, hw), x_r.dtype),
        in_specs=[pl.BlockSpec(memory_space=pltpu.MemorySpace.VMEM)] * 3,
        out_specs=pl.BlockSpec(memory_space=pltpu.MemorySpace.VMEM),
        compiler_params=pltpu.CompilerParams(vmem_limit_bytes=32 * 1024 * 1024),
    )(x_r, gamma.reshape(1, c, 1), beta.reshape(1, c, 1))


# ----------------------------------------------------------------------------
# Public wrapper
# ----------------------------------------------------------------------------

def dynamic_batch_norm_2d(x_nchw, weight, bias, eps=1e-5,
                          fast_path_max_bytes=2 * 1024 * 1024):
    """OFA DynamicBatchNorm2d forward (training-mode batch norm).

    x_nchw : (N, C, H, W) with C <= max_feature_dim
    weight : (max_feature_dim,)  -- bn.weight
    bias   : (max_feature_dim,)  -- bn.bias
    """
    n, c, h, w = x_nchw.shape
    gamma = weight[:c]           # the "dynamic" slicing
    beta = bias[:c]

    # NCHW -> (N, C, H*W): free reshape, no transpose. H*W on lanes, C on sublanes.
    x_r = x_nchw.reshape(n, c, h * w)

    if x_nchw.size * x_nchw.dtype.itemsize <= fast_path_max_bytes:
        y_r = _bn_small(x_r, gamma, beta, eps)
    else:
        y_r = _bn_tiled(x_r, gamma, beta, eps)

    return y_r.reshape(n, c, h, w)


if __name__ == "__main__":
    key = jax.random.PRNGKey(0)
    kx, kw, kb = jax.random.split(key, 3)

    max_feature_dim = 8        # bn = nn.BatchNorm2d(max_feature_dim)
    N, C, H, W = 2, 4, 16, 16  # active channels C < max_feature_dim -> sliced path

    x = jax.random.normal(kx, (N, C, H, W), dtype=jnp.float32)
    weight = 1.0 + 0.1 * jax.random.normal(kw, (max_feature_dim,), jnp.float32)
    bias = 0.1 * jax.random.normal(kb, (max_feature_dim,), jnp.float32)

    # Fast (single-block fused) path and tiled two-pass path.
    y_fast = dynamic_batch_norm_2d(x, weight, bias, eps=1e-5)
    y_tiled = dynamic_batch_norm_2d(x, weight, bias, eps=1e-5,
                                    fast_path_max_bytes=0)
    jax.block_until_ready((y_fast, y_tiled))

    # Pure-JAX reference.
    mean = jnp.mean(x, axis=(0, 2, 3), keepdims=True)
    var = jnp.mean((x - mean) ** 2, axis=(0, 2, 3), keepdims=True)
    ref = (x - mean) / jnp.sqrt(var + 1e-5) * weight[:C].reshape(1, C, 1, 1) \
        + bias[:C].reshape(1, C, 1, 1)

    assert jnp.allclose(y_fast, ref, atol=1e-4, rtol=1e-4)
    assert jnp.allclose(y_tiled, ref, atol=1e-4, rtol=1e-4)

    print("KERNEL_OK")
</pallas_src>

<mosaic_0001>
module attributes {stable_mosaic.version = 11 : i64} {
  func.func @_bn_small_kernel(%arg0: memref<2x4x256xf32, #tpu.memory_space<vmem>>, %arg1: memref<1x4x1xf32, #tpu.memory_space<vmem>>, %arg2: memref<1x4x1xf32, #tpu.memory_space<vmem>>, %arg3: memref<2x4x256xf32, #tpu.memory_space<vmem>>) attributes {dimension_semantics = [], scalar_prefetch = 0 : i64, scratch_operands = 0 : i64, tpu.core_type = #tpu.core_type<tc>} {
    %c0 = arith.constant 0 : index
    %c0_0 = arith.constant 0 : index
    %c0_1 = arith.constant 0 : index
    %0 = vector.load %arg0[%c0, %c0_0, %c0_1] : memref<2x4x256xf32, #tpu.memory_space<vmem>>, vector<2x4x256xf32>
    %cst = arith.constant dense<0.000000e+00> : vector<2x4xf32>
    %1 = vector.multi_reduction <add>, %0, %cst [2] : vector<2x4x256xf32> to vector<2x4xf32>
    %2 = vector.shape_cast %1 : vector<2x4xf32> to vector<2x4x1xf32>
    %cst_2 = arith.constant dense<0.000000e+00> : vector<4x1xf32>
    %3 = vector.multi_reduction <add>, %2, %cst_2 [0] : vector<2x4x1xf32> to vector<4x1xf32>
    %4 = vector.shape_cast %3 : vector<4x1xf32> to vector<1x4x1xf32>
    %5 = arith.mulf %0, %0 : vector<2x4x256xf32>
    %cst_3 = arith.constant dense<0.000000e+00> : vector<2x4xf32>
    %6 = vector.multi_reduction <add>, %5, %cst_3 [2] : vector<2x4x256xf32> to vector<2x4xf32>
    %7 = vector.shape_cast %6 : vector<2x4xf32> to vector<2x4x1xf32>
    %cst_4 = arith.constant dense<0.000000e+00> : vector<4x1xf32>
    %8 = vector.multi_reduction <add>, %7, %cst_4 [0] : vector<2x4x1xf32> to vector<4x1xf32>
    %9 = vector.shape_cast %8 : vector<4x1xf32> to vector<1x4x1xf32>
    %cst_5 = arith.constant 0.001953125 : f32
    %10 = vector.broadcast %cst_5 : f32 to vector<1x4x1xf32>
    %11 = arith.mulf %4, %10 : vector<1x4x1xf32>
    %cst_6 = arith.constant 0.001953125 : f32
    %12 = vector.broadcast %cst_6 : f32 to vector<1x4x1xf32>
    %13 = arith.mulf %9, %12 : vector<1x4x1xf32>
    %14 = arith.mulf %11, %11 : vector<1x4x1xf32>
    %15 = arith.subf %13, %14 : vector<1x4x1xf32>
    %cst_7 = arith.constant 0.000000e+00 : f32
    %16 = vector.broadcast %cst_7 : f32 to vector<1x4x1xf32>
    %17 = arith.maximumf %15, %16 : vector<1x4x1xf32>
    %cst_8 = arith.constant 9.99999974E-6 : f32
    %18 = vector.broadcast %cst_8 : f32 to vector<1x4x1xf32>
    %19 = arith.addf %17, %18 : vector<1x4x1xf32>
    %20 = math.rsqrt %19 : vector<1x4x1xf32>
    %c0_9 = arith.constant 0 : index
    %c0_10 = arith.constant 0 : index
    %c0_11 = arith.constant 0 : index
    %21 = vector.load %arg1[%c0_9, %c0_10, %c0_11] : memref<1x4x1xf32, #tpu.memory_space<vmem>>, vector<1x4x1xf32>
    %22 = arith.mulf %21, %20 : vector<1x4x1xf32>
    %c0_12 = arith.constant 0 : index
    %c0_13 = arith.constant 0 : index
    %c0_14 = arith.constant 0 : index
    %23 = vector.load %arg2[%c0_12, %c0_13, %c0_14] : memref<1x4x1xf32, #tpu.memory_space<vmem>>, vector<1x4x1xf32>
    %24 = arith.mulf %11, %22 : vector<1x4x1xf32>
    %25 = arith.subf %23, %24 : vector<1x4x1xf32>
    %26 = vector.broadcast %22 : vector<1x4x1xf32> to vector<2x4x256xf32>
    %27 = arith.mulf %0, %26 : vector<2x4x256xf32>
    %28 = vector.broadcast %25 : vector<1x4x1xf32> to vector<2x4x256xf32>
    %29 = arith.addf %27, %28 : vector<2x4x256xf32>
    %c0_15 = arith.constant 0 : index
    %c0_16 = arith.constant 0 : index
    %c0_17 = arith.constant 0 : index
    %30 = vector.load %arg3[%c0_15, %c0_16, %c0_17] : memref<2x4x256xf32, #tpu.memory_space<vmem>>, vector<2x4x256xf32>
    tpu.vector_store %arg3[%c0_15, %c0_16, %c0_17], %29 {strides = array<i32>} : memref<2x4x256xf32, #tpu.memory_space<vmem>>, vector<2x4x256xf32>,
    return
  }
}

</mosaic_0001>

<bundles_post_ra>
// kernel: tpu_custom_call.1
= control target key start
LH: loop header
LB: loop body
LE: loop exit
PB: predicated region body
PF: predicated region fallthrough
CT: control target
= control target key end

     0   :  { %8 = vsyncpa [#allocation3], 0  ;;  %s259_s0 = inlined_call_operand.hbm [shape: f32[2,4,256], index: 0, kind: input, shape index: {}]   ;;  %s260_s1 = inlined_call_operand.vmem [shape: f32[1,4,1], index: 1, kind: input, shape index: {}]   ;;  %s261_s2 = inlined_call_operand.vmem [shape: f32[1,4,1], index: 2, kind: input, shape index: {}]   ;;  %s262_s3 = inlined_call_operand.hbm [shape: f32[2,4,256], index: 3, kind: output, shape index: {}]  }
   0x1   :  { %9 = vsyncpa [#allocation4], 0  ;;  %s187_s12 = smov [#allocation2]  }
   0x2   :  { %s15_s13 = sshll.u32 %s187_s12, 4  ;;  %s16_s13 = int_to_ptr.vmem [resolvable:$true] %s15_s13 }
   0x3   :  { %s151_s14 = scalar_lea.vmem %s16_s13, 256  ;;  %p156_p1 = scmp.lt.s32.totalorder %s16_s13, %s16_s13 }
   0x4   :  { %p152_p0 = scmp.ne.s32.totalorder %s16_s13, %s151_s14  ;;  %p157_p2 = scmp.lt.s32.totalorder %s151_s14, %s151_s14 }
   0x6   :  { %p158_p3 = por %p157_p2, %p156_p1 }
   0x8   :  { %p159_p4 = pnand %p158_p3, %p152_p0 }
   0xa   :  { %162 = shalt.err (!%p159_p4)
}
   0xb   :  { %s188_s15 = smov 128   ;;  %s189_s16 = smov 8  }
   0xc   :  { %21 = dma.hbm_to_vmem [thread:$0]  %s259_s0, 256, %s16_s13, [#allocation3], %s188_s15, %s188_s15, %s189_s16  }
   0xd   :  { %183 = dma.done.wait [#allocation3], 256  }
   0xe   :  { %184 = vsyncadd [#allocation3], 4294967040  ;;  %vm37_vm0 = vcmask 1043456   ;;  %v219_v0 = vld [vmem:[#allocation2] sm:$0xff]  ;;  %v221_v1 = vld [vmem:[#allocation2 + $0x8] sm:$0xff]  ;;  %v190_v20 = vmov 0   ;;  %v91_v45 = vlaneseq }
   0xf   :  { %v33_v2 = vcombine.high %v219_v0, %v219_v0  ;;  %v38_v3 = vsel %vm37_vm0, %v219_v0, 0.0  ;;  %v51_v4 = vmul.f32 %v219_v0, %v219_v0  ;;  %v34_v5 = vcombine.high %v221_v1, %v221_v1  ;;  %137 = vset.pattern.permute.xlu0 %v190_v20  ;;  %138 = vset.pattern.permute.xlu1 %v190_v20  ;;  %v79_v37 = vld [vmem:[%s260_s1] sm:$0xf]  ;;  %s192_s1 = smov [#allocation5]  }
  0x10   :  { %v43_v6 = vsel %vm37_vm0, %v221_v1, 0.0  ;;  %v52_v7 = vmul.f32 %v221_v1, %v221_v1  ;;  %v81_v40 = vld [vmem:[%s261_s2] sm:$0xf]  ;;  %v191_v43 = vmov 839922192   ;;  %v92_v47 = vshrl.u32 %v91_v45, 7 }
  0x11   :  { %v39_v8 = vsel %vm37_vm0, %v33_v2, 0.0  ;;  %v55_v9 = vcombine.high %v51_v4, %v51_v4  ;;  %v59_v10 = vsel %vm37_vm0, %v51_v4, 0.0  ;;  %v44_v11 = vsel %vm37_vm0, %v34_v5, 0.0  ;;  %s119_s22 = sshll.u32 %s192_s1, 4  ;;  %s120_s22 = int_to_ptr.vmem [resolvable:$true] %s119_s22 }
  0x12   :  { %v40_v12 = vadd.f32 %v39_v8, %v38_v3  ;;  %v56_v13 = vcombine.high %v52_v7, %v52_v7  ;;  %v64_v15 = vsel %vm37_vm0, %v52_v7, 0.0  ;;  %v45_v17 = vadd.f32 %v44_v11, %v43_v6  ;;  %s163_s2 = scalar_lea.vmem %s120_s22, 256  ;;  %p168_p6 = scmp.lt.s32.totalorder %s120_s22, %s120_s22 }
  0x13   :  { %v60_v14 = vsel %vm37_vm0, %v55_v9, 0.0  ;;  %v89_v44 = vunpack.c.l.s4 %v191_v43  ;;  %p164_p5 = scmp.ne.s32.totalorder %s120_s22, %s163_s2  ;;  %p169_p7 = scmp.lt.s32.totalorder %s163_s2, %s163_s2 }
  0x14   :  { %41 = vadd.xlane.f32.xlu0 %v40_v12  ;;  %v61_v16 = vadd.f32 %v60_v14, %v59_v10  ;;  %v65_v18 = vsel %vm37_vm0, %v56_v13, 0.0 }
  0x15   :  { %v66_v19 = vadd.f32 %v65_v18, %v64_v15  ;;  %v90_v46 = vunpack.c.0.s8 %v89_v44  ;;  %p170_p8 = por %p169_p7, %p168_p6 }
  0x16   :  { %62 = vadd.xlane.f32.xlu1 %v61_v16 }
  0x17   :  { %v93_v48 = vsub.s32 %v90_v46, %v92_v47  ;;  %p171_p9 = pnand %p170_p8, %p164_p5 }
  0x18   :  { %46 = vadd.xlane.f32.xlu0 %v45_v17 }
  0x1a   :  { %67 = vadd.xlane.f32.xlu1 %v66_v19 }
  0x9d   :  { %v42_v21 = vpop.xlane.xlu0 %41 }
  0x9e   :  { %v48_v24 = vsel %vm37_vm0, %v42_v21, 0.0 }
  0x9f   :  { %v63_v22 = vpop.xlane.xlu1 %62 }
  0xa0   :  { %v69_v28 = vsel %vm37_vm0, %v63_v22, 0.0 }
  0xa1   :  { %v47_v23 = vpop.xlane.xlu0 %46 }
  0xa2   :  { %v49_v25 = vsel %vm37_vm0, %v47_v23, 0.0 }
  0xa3   :  { %v50_v26 = vadd.f32 %v49_v25, %v48_v24  ;;  %v68_v27 = vpop.xlane.xlu1 %67 }
  0xa4   :  { %v70_v29 = vsel %vm37_vm0, %v68_v27, 0.0 }
  0xa5   :  { %v72_v30 = vmul.f32 0.001953125, %v50_v26  ;;  %v71_v31 = vadd.f32 %v70_v29, %v69_v28 }
  0xa7   :  { %v74_v32 = vmul.f32 %v72_v30, %v72_v30  ;;  %v73_v33 = vmul.f32 0.001953125, %v71_v31 }
  0xa9   :  { %v75_v34 = vsub.f32 %v73_v33, %v74_v32 }
  0xab   :  { %v76_v35 = vmax.f32 %v75_v34, 0.0 }
  0xad   :  { %v77_v36 = vadd.f32 1e-05, %v76_v35 }
  0xaf   :  { %141 = vrsqrt.f32 %v77_v36 }
  0xbc   :  { %v142_v38 = vpop.eup %141 }
  0xbd   :  { %v80_v39 = vmul.f32 %v142_v38, %v79_v37 }
  0xbf   :  { %86 = vperm.xlu0 %137, %v80_v39   ;;  %v82_v41 = vmul.f32 %v80_v39, %v72_v30 }
  0xc1   :  { %v83_v42 = vsub.f32 %v81_v40, %v82_v41 }
  0xc3   :  { %100 = vperm.xlu1 %138, %v83_v42  }
 0x13a   :  { %v87_v49 = vpop.permute.xlu0 %86 }
 0x13b   :  { %v94_v50 = vrot.slane %v87_v49, %v93_v48 }
 0x13d   :  { %v96_v52 = vmul.f32 %v94_v50, %v219_v0  ;;  %v97_v53 = vmul.f32 %v94_v50, %v221_v1 }
 0x13e   :  { %v101_v51 = vpop.permute.xlu1 %100 }
 0x13f   :  { %v108_v54 = vrot.slane %v101_v51, %v93_v48 }
 0x141   :  { %v110_v55 = vadd.f32 %v108_v54, %v96_v52  ;;  %v111_v56 = vadd.f32 %v108_v54, %v97_v53 }
 0x143   :  { %112 = vst [vmem:[#allocation5] sm:$0xff] %v110_v55  ;;  %113 = vst [vmem:[#allocation5 + $0x8] sm:$0xff] %v111_v56 }
 0x144   :  { %174 = shalt.err (!%p171_p9)
}
 0x145   :  { %125 = dma.vmem_to_hbm [thread:$0]  %s120_s22, 256, %s262_s3, [#allocation4], %s188_s15, %s188_s15, %s189_s16  }
 0x146   :  { %185 = dma.done.wait [#allocation4], 256  }
 0x147   :  { %186 = vsyncadd [#allocation4], 4294967040 }
 0x148   :  { %129 = vsyncpa [#allocation3], 1 }
 0x149   :  { %130 = vsyncpa [#allocation4], 1 }

</bundles_post_ra>
